<compile_context>
chip_gen: v7x
topology: tpu7x:2x2x1
jax: 0.10.0
libtpu: 0.0.40
codegen_flags: <defaults>
</compile_context>

<pallas_src>
import jax
import jax.numpy as jnp
from jax import lax
from jax.experimental import pallas as pl
from jax.experimental.pallas import tpu as pltpu


def _round_up(v: int, m: int) -> int:
    return (v + m - 1) // m * m


def _fused_linear_kernel(x_ref, w_ref, b_ref, o_ref):
    # x_ref: (tb, D)  w_ref: (D, D)  b_ref: (1, D)  o_ref: (tb, D)
    acc = jnp.dot(x_ref[...], w_ref[...], preferred_element_type=jnp.float32)
    o_ref[...] = (acc + b_ref[...]).astype(o_ref.dtype)


@jax.jit
def dummy_forward(x, w1, b1, w2, b2):
    """Forward of Dummy: fc2(fc1(x)).

    x:  (B, 10)
    w1, w2: (10, 10) PyTorch layout [out_features, in_features]
    b1, b2: (10,)
    """
    B, D = x.shape

    # ---- one-time algebraic fusion of the two linears (no wrapper transposes) ----
    # W_fused[in, out] = sum_h w1[h, in] * w2[out, h]
    w_fused = lax.dot_general(
        w1, w2, (((0,), (1,)), ((), ())), preferred_element_type=jnp.float32
    ).astype(x.dtype)                                                   # (in, out)
    b_fused = (jnp.dot(w2, b1, preferred_element_type=jnp.float32) + b2
               ).reshape(1, D).astype(jnp.float32)                      # (1, out)

    # ---- batch-tile selection (trace-time Python) ----
    TB_MAX = 4096
    if B <= 16:
        n_steps = 1                       # too little work to split across TCs
    else:
        n_steps = max(2, pl.cdiv(B, TB_MAX))   # >=2 steps so v7x dual-TC can shard
    tb = min(_round_up(pl.cdiv(B, n_steps), 8), TB_MAX)
    grid = (pl.cdiv(B, tb),)              # Pallas masks the (possibly) partial last block

    cost = pl.CostEstimate(
        flops=2 * B * D * D,
        transcendentals=0,
        bytes_accessed=x.size * x.dtype.itemsize * 2        # x in + y out
        + w_fused.size * w_fused.dtype.itemsize
        + b_fused.size * b_fused.dtype.itemsize,
    )

    out = pl.pallas_call(
        _fused_linear_kernel,
        out_shape=jax.ShapeDtypeStruct((B, D), x.dtype),
        grid=grid,
        in_specs=[
            pl.BlockSpec((tb, D), lambda i: (i, 0)),   # x tile, streamed over batch
            pl.BlockSpec((D, D), lambda i: (0, 0)),    # fused weight (resident)
            pl.BlockSpec((1, D), lambda i: (0, 0)),    # fused bias   (resident)
        ],
        out_specs=pl.BlockSpec((tb, D), lambda i: (i, 0)),
        compiler_params=pltpu.CompilerParams(
            dimension_semantics=("parallel",)),
        cost_estimate=cost,
    )(x, w_fused, b_fused)

    return out


if __name__ == "__main__":
    key = jax.random.PRNGKey(0)
    kx, k1, k2, k3, k4 = jax.random.split(key, 5)

    B, D = 8, 10
    x = jax.random.normal(kx, (B, D), dtype=jnp.float32)

    # PyTorch Linear shapes: W [out, in], b [out]; deterministic uniform init.
    bound = 1.0 / jnp.sqrt(D)
    w1 = jax.random.uniform(k1, (D, D), minval=-bound, maxval=bound, dtype=jnp.float32)
    b1 = jax.random.uniform(k2, (D,), minval=-bound, maxval=bound, dtype=jnp.float32)
    w2 = jax.random.uniform(k3, (D, D), minval=-bound, maxval=bound, dtype=jnp.float32)
    b2 = jax.random.uniform(k4, (D,), minval=-bound, maxval=bound, dtype=jnp.float32)

    out = dummy_forward(x, w1, b1, w2, b2)
    out = jax.block_until_ready(out)

    # Cross-check against plain JAX reference (sequential, unfused form).
    ref = (x @ w1.T + b1) @ w2.T + b2
    assert out.shape == (B, D)
    assert jnp.allclose(out, ref, atol=1e-5, rtol=1e-4), "mismatch vs reference"

    print("KERNEL_OK")
</pallas_src>

<mosaic_0001>
module attributes {stable_mosaic.version = 11 : i64} {
  func.func @_fused_linear_kernel(%arg0: i32, %arg1: memref<8x10xf32, #tpu.memory_space<vmem>>, %arg2: memref<10x10xf32, #tpu.memory_space<vmem>>, %arg3: memref<1x10xf32, #tpu.memory_space<vmem>>, %arg4: memref<8x10xf32, #tpu.memory_space<vmem>>) attributes {dimension_semantics = [#tpu.dimension_semantics<parallel>], iteration_bounds = array<i64: 1>, scalar_prefetch = 0 : i64, scratch_operands = 0 : i64, tpu.core_type = #tpu.core_type<tc>, window_params = [{transform_indices = @transform_0, window_bounds = array<i64: 8, 10>}, {pipeline_mode = #tpu.pipeline_mode<synchronous>, transform_indices = @transform_1, window_bounds = array<i64: 10, 10>}, {pipeline_mode = #tpu.pipeline_mode<synchronous>, transform_indices = @transform_2, window_bounds = array<i64: 1, 10>}, {transform_indices = @transform_3, window_bounds = array<i64: 8, 10>}]} {
    %c0 = arith.constant 0 : index
    %c0_0 = arith.constant 0 : index
    %0 = vector.load %arg1[%c0, %c0_0] : memref<8x10xf32, #tpu.memory_space<vmem>>, vector<8x10xf32>
    %c0_1 = arith.constant 0 : index
    %c0_2 = arith.constant 0 : index
    %1 = vector.load %arg2[%c0_1, %c0_2] : memref<10x10xf32, #tpu.memory_space<vmem>>, vector<10x10xf32>
    %cst = arith.constant dense<0.000000e+00> : vector<8x10xf32>
    %2 = tpu.matmul %0, %1, %cst {dimension_numbers = #tpu.dot_dimension_numbers<[1], [0], [0], [1], [0, 0, 1, 1], [], []>} : vector<8x10xf32>, vector<10x10xf32>, vector<8x10xf32> -> vector<8x10xf32>
    %c0_3 = arith.constant 0 : index
    %c0_4 = arith.constant 0 : index
    %3 = vector.load %arg3[%c0_3, %c0_4] : memref<1x10xf32, #tpu.memory_space<vmem>>, vector<1x10xf32>
    %4 = vector.broadcast %3 : vector<1x10xf32> to vector<8x10xf32>
    %5 = arith.addf %2, %4 : vector<8x10xf32>
    %c0_5 = arith.constant 0 : index
    %c0_6 = arith.constant 0 : index
    %6 = vector.load %arg4[%c0_5, %c0_6] : memref<8x10xf32, #tpu.memory_space<vmem>>, vector<8x10xf32>
    tpu.vector_store %arg4[%c0_5, %c0_6], %5 {strides = array<i32>} : memref<8x10xf32, #tpu.memory_space<vmem>>, vector<8x10xf32>,
    return
  }
  func.func @transform_0(%arg0: i32) -> (i32, i32) {
    %c0_i32 = arith.constant 0 : i32
    %c0_i32_0 = arith.constant 0 : i32
    return %arg0, %c0_i32 : i32, i32
  }
  func.func @transform_1(%arg0: i32) -> (i32, i32) {
    %c0_i32 = arith.constant 0 : i32
    %c0_i32_0 = arith.constant 0 : i32
    %c0_i32_1 = arith.constant 0 : i32
    return %c0_i32, %c0_i32_0 : i32, i32
  }
  func.func @transform_2(%arg0: i32) -> (i32, i32) {
    %c0_i32 = arith.constant 0 : i32
    %c0_i32_0 = arith.constant 0 : i32
    %c0_i32_1 = arith.constant 0 : i32
    return %c0_i32, %c0_i32_0 : i32, i32
  }
  func.func @transform_3(%arg0: i32) -> (i32, i32) {
    %c0_i32 = arith.constant 0 : i32
    %c0_i32_0 = arith.constant 0 : i32
    return %arg0, %c0_i32 : i32, i32
  }
}

</mosaic_0001>

<bundles_post_ra>
// kernel: dummy_forward.1
= control target key start
LH: loop header
LB: loop body
LE: loop exit
PB: predicated region body
PF: predicated region fallthrough
CT: control target
= control target key end

     0   :  { %vm29_vm0 = vcmask 1041408   ;;  %v164_v2 = vmov 0.0|0.0   ;;  %vm165_vm1 = vmmov 1   ;;  %vm166_vm3 = vmmov 0   ;;  %s213_s0 = inlined_call_operand.vmem [shape: f32[8,10], index: 0, kind: input, shape index: {}]   ;;  %s214_s1 = inlined_call_operand.vmem [shape: f32[10,10], index: 1, kind: input, shape index: {}]   ;;  %s215_s2 = inlined_call_operand.vmem [shape: f32[1,10], index: 2, kind: input, shape index: {}]   ;;  %s216_s3 = inlined_call_operand.hbm [shape: f32[8,10], index: 3, kind: output, shape index: {}]  }
   0x1   :  { %v16_v0 = vld [vmem:[%s214_s1] sm:$0xff]  ;;  %v17_v1 = vld [vmem:[%s214_s1 + $0x8] sm:$0x3]  ;;  %131 = vmatprep.subr.bf16.mxu0 %v164_v2  ;;  %vm133_vm2 = vmpackc.low %vm29_vm0, %vm165_vm1  ;;  %v167_v4 = vmov 0.0  }
   0x2   :  { %v132_v3 = vpack.c.bf16 %v17_v1, %v16_v0  ;;  %128 = vmatprep.mubr.msk.f32.mxu0 %vm166_vm3, %v167_v4 }
   0x3   :  { %8 = vsyncpa [#allocation3], 0  ;;  %v15_v5 = vld [vmem:[%s213_s0] sm:$0xff]  ;;  %vm25_vm4 = vcmask 80896   ;;  %s168_s1 = smov [#allocation2]  }
   0x4   :  { %134 = vmatpush3.bf16.msk.msra.mxu0 %vm133_vm2, %v132_v3  ;;  %v118_v6 = vld [vmem:[%s215_s2] ss:$0 sm:$0xff]  ;;  %s110_s20 = sshll.u32 %s168_s1, 4  ;;  %s111_s20 = int_to_ptr.vmem [resolvable:$true] %s110_s20 }
   0x5   :  { %s140_s21 = scalar_lea.vmem %s111_s20, 128  ;;  %p145_p1 = scmp.lt.s32.totalorder %s111_s20, %s111_s20 }
   0x6   :  { %p141_p0 = scmp.ne.s32.totalorder %s111_s20, %s140_s21  ;;  %p146_p2 = scmp.lt.s32.totalorder %s140_s21, %s140_s21 }
   0x7   :  { %129 = vmatmul.mubr.msk.f32.vlgmr.msra.gmra.mrb[0].mxu0 %vm25_vm4, %v15_v5 }
   0x8   :  { %p147_p3 = por %p146_p2, %p145_p1 }
   0xa   :  { %p148_p4 = pnand %p147_p3, %p141_p0 }
  0xda   :  { %v99_v7 = vpop.f32.mrb[0].mxu0 }
  0xdb   :  { %v100_v8 = vadd.f32 %v118_v6, %v99_v7  ;;  %v130_v9 = vpop.f32.mrb[1].mxu0 }
  0xdd   :  { %103 = vst.msk [vmem:[#allocation2] sm:$0xff] %vm25_vm4, %v100_v8 }
  0xde   :  { %151 = shalt.err (!%p148_p4)
}
  0xdf   :  { %s152_s23 = scalar_lea.hbm %s216_s3, 128 }
  0xe0   :  { %p153_p5 = scmp.ne.s32.totalorder %s216_s3, %s152_s23  ;;  %p156_p6 = scmp.lt.u32.totalorder %s152_s23, %s216_s3 }
  0xe2   :  { %p158_p7 = pnand %p156_p6, %p153_p5 }
  0xe4   :  { %161 = shalt.err (!%p158_p7)
}
  0xe5   :  { %113 = dma.vmem_to_hbm [thread:$0]  %s111_s20, 128, %s216_s3, [#allocation3]  }
  0xe6   :  { %162 = dma.done.wait [#allocation3], 128  }
  0xe7   :  { %163 = vsyncadd [#allocation3], 4294967168 }
  0xe8   :  { %117 = vsyncpa [#allocation3], 1 }

</bundles_post_ra>
